<compile_context>
chip_gen: v7x
topology: tpu7x:2x2x1
jax: 0.10.0
libtpu: 0.0.40
codegen_flags: <defaults>
</compile_context>

<pallas_src>
import functools

import jax
import jax.numpy as jnp
from jax.experimental import pallas as pl
from jax.experimental.pallas import tpu as pltpu

EMBED_DIM = 32
DROPOUT_P = 0.2
LN_EPS = 1e-5
LANES = 128
TILE_R_PACKED = 512  # packed rows per grid step (each packed row = LANES//D logical rows)


def _round_up(n, m):
    return ((n + m - 1) // m) * m


def _hash_u32(x):
    """32-bit finalizer-style mixer (pure VPU integer ops, portable everywhere)."""
    x = x ^ (x >> 16)
    x = x * jnp.uint32(0x7FEB352D)
    x = x ^ (x >> 15)
    x = x * jnp.uint32(0x846CA68B)
    x = x ^ (x >> 16)
    return x


def sublayer_connection_kernel(seed_ref, x_ref, wblk_ref, mavg_ref, b_ref, g_ref,
                               beta_ref, o_ref, *, dropout_p):
    x = x_ref[...]                      # (TR, L) f32, lane-dense packed rows
    mavg = mavg_ref[...]                # (L, L) block-diagonal 1/D averaging matrix
    gamma = g_ref[...]                  # (1, L)  read once, reused by both norms
    beta = beta_ref[...]                # (1, L)

    def seg_layernorm(v):
        # Per-logical-row (D-lane segment) mean/variance via MXU matmul with the
        # block-diagonal averaging matrix (keeps the layout lane-dense, no XLU reshuffle).
        mu = jnp.dot(v, mavg, preferred_element_type=jnp.float32)
        d = v - mu
        var = jnp.dot(d * d, mavg, preferred_element_type=jnp.float32)
        return d * jax.lax.rsqrt(var + LN_EPS) * gamma + beta

    # --- norm(x) ---
    n1 = seg_layernorm(x)

    # --- sublayer: Linear(D, D) applied per D-lane segment via block-diag weight ---
    # TODO(synk): if embedding_dim scales up (512+), cast MXU operands to bf16
    # (keep preferred_element_type=f32); at D=32 the matmul is noise.
    s = jnp.dot(n1, wblk_ref[...], preferred_element_type=jnp.float32) + b_ref[...]

    # --- dropout (training mode, scaled by 1/(1-p)), stateless counter-based hash ---
    tr, lanes = x.shape
    row = jax.lax.broadcasted_iota(jnp.int32, (tr, lanes), 0)
    col = jax.lax.broadcasted_iota(jnp.int32, (tr, lanes), 1)
    gidx = ((pl.program_id(0) * tr + row) * lanes + col).astype(jnp.uint32)
    seed = seed_ref[0].astype(jnp.uint32)
    bits = _hash_u32(gidx ^ (seed * jnp.uint32(0x9E3779B9)))
    thresh = jnp.uint32(int(dropout_p * (2 ** 32)))
    keep = bits >= thresh
    dropped = jnp.where(keep, s * (1.0 / (1.0 - dropout_p)), 0.0)

    # --- residual add + second norm (same shared gamma/beta, as in the module) ---
    o_ref[...] = seg_layernorm(x + dropped).astype(o_ref.dtype)


def sublayer_connection(x, w, b, gamma, beta, seed, dropout_p=DROPOUT_P):
    """x: (B, S, D) float32; w: (D, D); b/gamma/beta: (D,). Returns (B, S, D) float32."""
    B, S, D = x.shape
    assert LANES % D == 0, "packing assumes embedding_dim divides 128"
    pack = LANES // D
    L = pack * D  # == 128

    R = B * S
    x2d = x.reshape(R, D).astype(jnp.float32)

    # Pad logical rows so they (a) pack into 128-lane rows and (b) tile evenly.
    rp_needed = pl.cdiv(R, pack)
    tile_r = min(TILE_R_PACKED, _round_up(rp_needed, 8))
    rp_pad = _round_up(rp_needed, tile_r)
    r_pad = rp_pad * pack
    if r_pad != R:
        x2d = jnp.pad(x2d, ((0, r_pad - R), (0, 0)))
    xp = x2d.reshape(rp_pad, L)  # lane-dense packed layout

    eye = jnp.eye(pack, dtype=jnp.float32)
    w_block = jnp.kron(eye, w.astype(jnp.float32))                        # (L, L)
    m_avg = jnp.kron(eye, jnp.full((D, D), 1.0 / D, dtype=jnp.float32))   # (L, L)
    b_p = jnp.tile(b.astype(jnp.float32), pack).reshape(1, L)
    g_p = jnp.tile(gamma.astype(jnp.float32), pack).reshape(1, L)
    beta_p = jnp.tile(beta.astype(jnp.float32), pack).reshape(1, L)
    seed_arr = jnp.asarray([seed], dtype=jnp.int32)

    grid = (rp_pad // tile_r,)
    out = pl.pallas_call(
        functools.partial(sublayer_connection_kernel, dropout_p=dropout_p),
        out_shape=jax.ShapeDtypeStruct((rp_pad, L), jnp.float32),
        grid_spec=pltpu.PrefetchScalarGridSpec(
            num_scalar_prefetch=1,  # seed -> SMEM, passed to index_maps as trailing arg
            grid=grid,
            in_specs=[
                pl.BlockSpec((tile_r, L), lambda i, *_: (i, 0)),   # x (tiled, pipelined)
                pl.BlockSpec((L, L), lambda i, *_: (0, 0)),        # block-diag W (resident)
                pl.BlockSpec((L, L), lambda i, *_: (0, 0)),        # averaging matrix (resident)
                pl.BlockSpec((1, L), lambda i, *_: (0, 0)),        # bias (resident)
                pl.BlockSpec((1, L), lambda i, *_: (0, 0)),        # gamma (resident)
                pl.BlockSpec((1, L), lambda i, *_: (0, 0)),        # beta (resident)
            ],
            out_specs=pl.BlockSpec((tile_r, L), lambda i, *_: (i, 0)),
        ),
        compiler_params=pltpu.CompilerParams(
            dimension_semantics=("parallel",),   # shard rows across TCs on v7x
        ),
    )(seed_arr, xp, w_block, m_avg, b_p, g_p, beta_p)

    out = out.reshape(r_pad, D)[:R]
    return out.reshape(B, S, D)


if __name__ == "__main__":
    key = jax.random.PRNGKey(0)
    kx, kw, kb = jax.random.split(key, 3)

    B, S, D = 2, 8, EMBED_DIM
    x = jax.random.normal(kx, (B, S, D), dtype=jnp.float32)

    # Deterministic synthetic parameters (shapes implied by the module + Linear sublayer).
    w = jax.random.normal(kw, (D, D), dtype=jnp.float32) * (1.0 / jnp.sqrt(D))
    b = jax.random.normal(kb, (D,), dtype=jnp.float32) * 0.01
    gamma = jnp.ones((D,), dtype=jnp.float32)   # nn.LayerNorm default weight
    beta = jnp.zeros((D,), dtype=jnp.float32)   # nn.LayerNorm default bias

    # Correctness check with dropout disabled (p=0 -> deterministic path).
    def _ref(xv):
        def ln(v):
            mu = v.mean(-1, keepdims=True)
            var = ((v - mu) ** 2).mean(-1, keepdims=True)
            return (v - mu) * jax.lax.rsqrt(var + LN_EPS) * gamma + beta
        s = ln(xv) @ w + b
        return ln(xv + s)

    y0 = sublayer_connection(x, w, b, gamma, beta, seed=0, dropout_p=0.0)
    jax.block_until_ready(y0)
    # Loose tolerance accounts for MXU default-precision f32 matmuls on real hardware.
    assert bool(jnp.allclose(y0, _ref(x), atol=5e-2, rtol=5e-2))

    # Training-mode run (dropout p=0.2).
    y = sublayer_connection(x, w, b, gamma, beta, seed=1234, dropout_p=DROPOUT_P)
    jax.block_until_ready(y)
    assert y.shape == (B, S, D) and y.dtype == jnp.float32
    assert bool(jnp.all(jnp.isfinite(y)))
    print("KERNEL_OK")
</pallas_src>

<mosaic_0001>
module attributes {stable_mosaic.version = 11 : i64} {
  func.func @sublayer_connection_kernel(%arg0: i32, %arg1: memref<1xi32, #tpu.memory_space<smem>>, %arg2: memref<8x128xf32, #tpu.memory_space<vmem>>, %arg3: memref<128x128xf32, #tpu.memory_space<vmem>>, %arg4: memref<128x128xf32, #tpu.memory_space<vmem>>, %arg5: memref<1x128xf32, #tpu.memory_space<vmem>>, %arg6: memref<1x128xf32, #tpu.memory_space<vmem>>, %arg7: memref<1x128xf32, #tpu.memory_space<vmem>>, %arg8: memref<8x128xf32, #tpu.memory_space<vmem>>) attributes {dimension_semantics = [#tpu.dimension_semantics<parallel>], iteration_bounds = array<i64: 1>, scalar_prefetch = 1 : i64, scratch_operands = 0 : i64, tpu.core_type = #tpu.core_type<tc>, window_params = [{transform_indices = @transform_0, window_bounds = array<i64: 8, 128>}, {pipeline_mode = #tpu.pipeline_mode<synchronous>, transform_indices = @transform_1, window_bounds = array<i64: 128, 128>}, {pipeline_mode = #tpu.pipeline_mode<synchronous>, transform_indices = @transform_2, window_bounds = array<i64: 128, 128>}, {pipeline_mode = #tpu.pipeline_mode<synchronous>, transform_indices = @transform_3, window_bounds = array<i64: 1, 128>}, {pipeline_mode = #tpu.pipeline_mode<synchronous>, transform_indices = @transform_4, window_bounds = array<i64: 1, 128>}, {pipeline_mode = #tpu.pipeline_mode<synchronous>, transform_indices = @transform_5, window_bounds = array<i64: 1, 128>}, {transform_indices = @transform_6, window_bounds = array<i64: 8, 128>}]} {
    %c0 = arith.constant 0 : index
    %c0_0 = arith.constant 0 : index
    %0 = vector.load %arg2[%c0, %c0_0] : memref<8x128xf32, #tpu.memory_space<vmem>>, vector<8x128xf32>
    %c0_1 = arith.constant 0 : index
    %c0_2 = arith.constant 0 : index
    %1 = vector.load %arg4[%c0_1, %c0_2] : memref<128x128xf32, #tpu.memory_space<vmem>>, vector<128x128xf32>
    %c0_3 = arith.constant 0 : index
    %c0_4 = arith.constant 0 : index
    %2 = vector.load %arg6[%c0_3, %c0_4] : memref<1x128xf32, #tpu.memory_space<vmem>>, vector<1x128xf32>
    %c0_5 = arith.constant 0 : index
    %c0_6 = arith.constant 0 : index
    %3 = vector.load %arg7[%c0_5, %c0_6] : memref<1x128xf32, #tpu.memory_space<vmem>>, vector<1x128xf32>
    %cst = arith.constant dense<0.000000e+00> : vector<8x128xf32>
    %4 = tpu.matmul %0, %1, %cst {dimension_numbers = #tpu.dot_dimension_numbers<[1], [0], [0], [1], [0, 0, 1, 1], [], []>} : vector<8x128xf32>, vector<128x128xf32>, vector<8x128xf32> -> vector<8x128xf32>
    %5 = arith.subf %0, %4 : vector<8x128xf32>
    %6 = arith.mulf %5, %5 : vector<8x128xf32>
    %cst_7 = arith.constant dense<0.000000e+00> : vector<8x128xf32>
    %7 = tpu.matmul %6, %1, %cst_7 {dimension_numbers = #tpu.dot_dimension_numbers<[1], [0], [0], [1], [0, 0, 1, 1], [], []>} : vector<8x128xf32>, vector<128x128xf32>, vector<8x128xf32> -> vector<8x128xf32>
    %cst_8 = arith.constant 9.99999974E-6 : f32
    %8 = vector.broadcast %cst_8 : f32 to vector<8x128xf32>
    %9 = arith.addf %7, %8 : vector<8x128xf32>
    %10 = math.rsqrt %9 : vector<8x128xf32>
    %11 = arith.mulf %5, %10 : vector<8x128xf32>
    %12 = vector.broadcast %2 : vector<1x128xf32> to vector<8x128xf32>
    %13 = arith.mulf %11, %12 : vector<8x128xf32>
    %14 = vector.broadcast %3 : vector<1x128xf32> to vector<8x128xf32>
    %15 = arith.addf %13, %14 : vector<8x128xf32>
    %c0_9 = arith.constant 0 : index
    %c0_10 = arith.constant 0 : index
    %16 = vector.load %arg3[%c0_9, %c0_10] : memref<128x128xf32, #tpu.memory_space<vmem>>, vector<128x128xf32>
    %cst_11 = arith.constant dense<0.000000e+00> : vector<8x128xf32>
    %17 = tpu.matmul %15, %16, %cst_11 {dimension_numbers = #tpu.dot_dimension_numbers<[1], [0], [0], [1], [0, 0, 1, 1], [], []>} : vector<8x128xf32>, vector<128x128xf32>, vector<8x128xf32> -> vector<8x128xf32>
    %c0_12 = arith.constant 0 : index
    %c0_13 = arith.constant 0 : index
    %18 = vector.load %arg5[%c0_12, %c0_13] : memref<1x128xf32, #tpu.memory_space<vmem>>, vector<1x128xf32>
    %19 = vector.broadcast %18 : vector<1x128xf32> to vector<8x128xf32>
    %20 = arith.addf %17, %19 : vector<8x128xf32>
    %21 = tpu.iota {dimensions = array<i32: 0>} : vector<8x128xi32>
    %22 = tpu.iota {dimensions = array<i32: 1>} : vector<8x128xi32>
    %c8_i32 = arith.constant 8 : i32
    %23 = arith.muli %arg0, %c8_i32 : i32
    %24 = vector.broadcast %23 : i32 to vector<8x128xi32>
    %25 = arith.addi %24, %21 : vector<8x128xi32>
    %c128_i32 = arith.constant 128 : i32
    %26 = vector.broadcast %c128_i32 : i32 to vector<8x128xi32>
    %27 = arith.muli %25, %26 : vector<8x128xi32>
    %28 = arith.addi %27, %22 : vector<8x128xi32>
    %c0_14 = arith.constant 0 : index
    %29 = memref.load %arg1[%c0_14] : memref<1xi32, #tpu.memory_space<smem>>
    %c-1640531527_i32 = arith.constant -1640531527 : i32
    %30 = arith.muli %29, %c-1640531527_i32 : i32
    %31 = vector.broadcast %30 : i32 to vector<8x128xi32>
    %32 = arith.xori %28, %31 : vector<8x128xi32>
    %c16_i32 = arith.constant 16 : i32
    %33 = vector.broadcast %c16_i32 : i32 to vector<8x128xi32>
    %34 = arith.shrui %32, %33 : vector<8x128xi32>
    %35 = arith.xori %32, %34 : vector<8x128xi32>
    %c2146121005_i32 = arith.constant 2146121005 : i32
    %36 = vector.broadcast %c2146121005_i32 : i32 to vector<8x128xi32>
    %37 = arith.muli %35, %36 : vector<8x128xi32>
    %c15_i32 = arith.constant 15 : i32
    %38 = vector.broadcast %c15_i32 : i32 to vector<8x128xi32>
    %39 = arith.shrui %37, %38 : vector<8x128xi32>
    %40 = arith.xori %37, %39 : vector<8x128xi32>
    %c-2073254261_i32 = arith.constant -2073254261 : i32
    %41 = vector.broadcast %c-2073254261_i32 : i32 to vector<8x128xi32>
    %42 = arith.muli %40, %41 : vector<8x128xi32>
    %c16_i32_15 = arith.constant 16 : i32
    %43 = vector.broadcast %c16_i32_15 : i32 to vector<8x128xi32>
    %44 = arith.shrui %42, %43 : vector<8x128xi32>
    %45 = arith.xori %42, %44 : vector<8x128xi32>
    %c0_i32 = arith.constant 0 : i32
    %46 = vector.broadcast %c0_i32 : i32 to vector<8x128xi32>
    %47 = arith.cmpi uge, %45, %46 : vector<8x128xi32>
    %cst_16 = arith.constant 1.000000e+00 : f32
    %48 = vector.broadcast %cst_16 : f32 to vector<8x128xf32>
    %49 = arith.mulf %20, %48 : vector<8x128xf32>
    %cst_17 = arith.constant 0.000000e+00 : f32
    %50 = vector.broadcast %cst_17 : f32 to vector<8x128xf32>
    %51 = arith.select %47, %49, %50 : vector<8x128xi1>, vector<8x128xf32>
    %52 = arith.addf %0, %51 : vector<8x128xf32>
    %cst_18 = arith.constant dense<0.000000e+00> : vector<8x128xf32>
    %53 = tpu.matmul %52, %1, %cst_18 {dimension_numbers = #tpu.dot_dimension_numbers<[1], [0], [0], [1], [0, 0, 1, 1], [], []>} : vector<8x128xf32>, vector<128x128xf32>, vector<8x128xf32> -> vector<8x128xf32>
    %54 = arith.subf %52, %53 : vector<8x128xf32>
    %55 = arith.mulf %54, %54 : vector<8x128xf32>
    %cst_19 = arith.constant dense<0.000000e+00> : vector<8x128xf32>
    %56 = tpu.matmul %55, %1, %cst_19 {dimension_numbers = #tpu.dot_dimension_numbers<[1], [0], [0], [1], [0, 0, 1, 1], [], []>} : vector<8x128xf32>, vector<128x128xf32>, vector<8x128xf32> -> vector<8x128xf32>
    %cst_20 = arith.constant 9.99999974E-6 : f32
    %57 = vector.broadcast %cst_20 : f32 to vector<8x128xf32>
    %58 = arith.addf %56, %57 : vector<8x128xf32>
    %59 = math.rsqrt %58 : vector<8x128xf32>
    %60 = arith.mulf %54, %59 : vector<8x128xf32>
    %61 = vector.broadcast %2 : vector<1x128xf32> to vector<8x128xf32>
    %62 = arith.mulf %60, %61 : vector<8x128xf32>
    %63 = vector.broadcast %3 : vector<1x128xf32> to vector<8x128xf32>
    %64 = arith.addf %62, %63 : vector<8x128xf32>
    %c0_21 = arith.constant 0 : index
    %c0_22 = arith.constant 0 : index
    %65 = vector.load %arg8[%c0_21, %c0_22] : memref<8x128xf32, #tpu.memory_space<vmem>>, vector<8x128xf32>
    tpu.vector_store %arg8[%c0_21, %c0_22], %64 {strides = array<i32>} : memref<8x128xf32, #tpu.memory_space<vmem>>, vector<8x128xf32>,
    return
  }
  func.func @transform_0(%arg0: i32, %arg1: memref<1xi32, #tpu.memory_space<smem>>) -> (i32, i32) {
    %c0_i32 = arith.constant 0 : i32
    %c0_i32_0 = arith.constant 0 : i32
    return %arg0, %c0_i32 : i32, i32
  }
  func.func @transform_1(%arg0: i32, %arg1: memref<1xi32, #tpu.memory_space<smem>>) -> (i32, i32) {
    %c0_i32 = arith.constant 0 : i32
    %c0_i32_0 = arith.constant 0 : i32
    %c0_i32_1 = arith.constant 0 : i32
    return %c0_i32, %c0_i32_0 : i32, i32
  }
  func.func @transform_2(%arg0: i32, %arg1: memref<1xi32, #tpu.memory_space<smem>>) -> (i32, i32) {
    %c0_i32 = arith.constant 0 : i32
    %c0_i32_0 = arith.constant 0 : i32
    %c0_i32_1 = arith.constant 0 : i32
    return %c0_i32, %c0_i32_0 : i32, i32
  }
  func.func @transform_3(%arg0: i32, %arg1: memref<1xi32, #tpu.memory_space<smem>>) -> (i32, i32) {
    %c0_i32 = arith.constant 0 : i32
    %c0_i32_0 = arith.constant 0 : i32
    %c0_i32_1 = arith.constant 0 : i32
    return %c0_i32, %c0_i32_0 : i32, i32
  }
  func.func @transform_4(%arg0: i32, %arg1: memref<1xi32, #tpu.memory_space<smem>>) -> (i32, i32) {
    %c0_i32 = arith.constant 0 : i32
    %c0_i32_0 = arith.constant 0 : i32
    %c0_i32_1 = arith.constant 0 : i32
    return %c0_i32, %c0_i32_0 : i32, i32
  }
  func.func @transform_5(%arg0: i32, %arg1: memref<1xi32, #tpu.memory_space<smem>>) -> (i32, i32) {
    %c0_i32 = arith.constant 0 : i32
    %c0_i32_0 = arith.constant 0 : i32
    %c0_i32_1 = arith.constant 0 : i32
    return %c0_i32, %c0_i32_0 : i32, i32
  }
  func.func @transform_6(%arg0: i32, %arg1: memref<1xi32, #tpu.memory_space<smem>>) -> (i32, i32) {
    %c0_i32 = arith.constant 0 : i32
    %c0_i32_0 = arith.constant 0 : i32
    return %arg0, %c0_i32 : i32, i32
  }
}

</mosaic_0001>

<bundles_post_ra>
// kernel: tpu_custom_call.1
= control target key start
LH: loop header
LB: loop body
LE: loop exit
PB: predicated region body
PF: predicated region fallthrough
CT: control target
= control target key end

     0   :  { %13 = vsyncpa [#allocation5], 0  ;;  %s1230_s0 = inlined_call_operand.<no memory space> [shape: s32[1], index: 0, kind: input, shape index: {}]   ;;  %s1231_s1 = inlined_call_operand.hbm [shape: f32[8,128], index: 1, kind: input, shape index: {}]   ;;  %s1232_s2 = inlined_call_operand.hbm [shape: f32[128,128], index: 2, kind: input, shape index: {}]   ;;  %s1233_s3 = inlined_call_operand.hbm [shape: f32[128,128], index: 3, kind: input, shape index: {}]   ;;  %s1234_s4 = inlined_call_operand.vmem [shape: f32[1,128], index: 4, kind: input, shape index: {}]   ;;  %s1235_s5 = inlined_call_operand.vmem [shape: f32[1,128], index: 5, kind: input, shape index: {}]   ;;  %s1236_s6 = inlined_call_operand.vmem [shape: f32[1,128], index: 6, kind: input, shape index: {}]   ;;  %s1237_s7 = inlined_call_operand.hbm [shape: f32[8,128], index: 7, kind: output, shape index: {}]  }
   0x1   :  { %14 = vsyncpa [#allocation8], 0 }
   0x2   :  { %15 = vsyncpa [#allocation6], 0  ;;  %s1012_s24 = smov [#allocation7]   ;;  %s918_s28 = scalar_lea.hbm %s1232_s2, 2048 }
   0x3   :  { %s31_s25 = sshll.u32 %s1012_s24, 4  ;;  %p919_p0 = scmp.ne.s32.totalorder %s1232_s2, %s918_s28  ;;  %s32_s25 = int_to_ptr.vmem [resolvable:$true] %s31_s25 }
   0x4   :  { %p922_p1 = scmp.lt.u32.totalorder %s918_s28, %s1232_s2 }
   0x6   :  { %p924_p2 = pnand %p922_p1, %p919_p0 }
   0x8   :  { %927 = shalt.err (!%p924_p2)
}
   0x9   :  { %s928_s10 = scalar_lea.vmem %s32_s25, 2048  ;;  %p933_p4 = scmp.lt.s32.totalorder %s32_s25, %s32_s25 }
   0xa   :  { %p929_p3 = scmp.ne.s32.totalorder %s32_s25, %s928_s10  ;;  %p934_p5 = scmp.lt.s32.totalorder %s928_s10, %s928_s10 }
   0xc   :  { %p935_p6 = por %p934_p5, %p933_p4 }
   0xe   :  { %p936_p7 = pnand %p935_p6, %p929_p3 }
  0x10   :  { %939 = shalt.err (!%p936_p7)
}
  0x11   :  { %s1013_s11 = smov 128   ;;  %s1014_s12 = smov 8  }
  0x12   :  { %37 = dma.hbm_to_vmem [thread:$0]  %s1232_s2, 2048, %s32_s25, [#allocation8], %s1013_s11, %s1013_s11, %s1014_s12  }
  0x13   :  { %s1015_s15 = smov [#allocation4]   ;;  %s1016_s17 = smov [#allocation9]  }
  0x14   :  { %s22_s16 = sshll.u32 %s1015_s15, 4  ;;  %s43_s18 = sshll.u32 %s1016_s17, 4  ;;  %s23_s16 = int_to_ptr.vmem [resolvable:$true] %s22_s16  ;;  %s44_s18 = int_to_ptr.vmem [resolvable:$true] %s43_s18 }
  0x15   :  { %s940_s21 = scalar_lea.hbm %s1231_s1, 128 }
  0x16   :  { %p941_p8 = scmp.ne.s32.totalorder %s1231_s1, %s940_s21  ;;  %p944_p9 = scmp.lt.u32.totalorder %s940_s21, %s1231_s1 }
  0x18   :  { %p946_p10 = pnand %p944_p9, %p941_p8 }
  0x1a   :  { %949 = shalt.err (!%p946_p10)
}
  0x1b   :  { %s950_s2 = scalar_lea.vmem %s23_s16, 128  ;;  %p955_p12 = scmp.lt.s32.totalorder %s23_s16, %s23_s16 }
  0x1c   :  { %p951_p11 = scmp.ne.s32.totalorder %s23_s16, %s950_s2  ;;  %p956_p13 = scmp.lt.s32.totalorder %s950_s2, %s950_s2 }
  0x1e   :  { %p957_p0 = por %p956_p13, %p955_p12 }
  0x20   :  { %p958_p1 = pnand %p957_p0, %p951_p11 }
  0x22   :  { %961 = shalt.err (!%p958_p1)
}
  0x23   :  { %25 = dma.hbm_to_vmem [thread:$0]  %s1231_s1, 128, %s23_s16, [#allocation5]  }
  0x24   :  { %s962_s30 = scalar_lea.hbm %s1233_s3, 2048 }
  0x25   :  { %p963_p2 = scmp.ne.s32.totalorder %s1233_s3, %s962_s30  ;;  %p966_p3 = scmp.lt.u32.totalorder %s962_s30, %s1233_s3 }
  0x27   :  { %p968_p4 = pnand %p966_p3, %p963_p2 }
  0x29   :  { %971 = shalt.err (!%p968_p4)
}
  0x2a   :  { %s972_s14 = scalar_lea.vmem %s44_s18, 2048  ;;  %p977_p6 = scmp.lt.s32.totalorder %s44_s18, %s44_s18 }
  0x2b   :  { %p973_p5 = scmp.ne.s32.totalorder %s44_s18, %s972_s14  ;;  %p978_p7 = scmp.lt.s32.totalorder %s972_s14, %s972_s14 }
  0x2d   :  { %p979_p8 = por %p978_p7, %p977_p6 }
  0x2f   :  { %p980_p9 = pnand %p979_p8, %p973_p5 }
  0x31   :  { %983 = shalt.err (!%p980_p9)
}
  0x32   :  { %49 = dma.hbm_to_vmem [thread:$0]  %s1233_s3, 2048, %s44_s18, [#allocation8], %s1013_s11, %s1013_s11, %s1014_s12  }
  0x33   :  { %1006 = dma.done.wait [#allocation5], 128  }
  0x34   :  { %1007 = vsyncadd [#allocation5], 4294967168 }
  0x35   :  { %1008 = dma.done.wait [#allocation8], 4096  }
  0x36   :  { %1009 = vsyncadd [#allocation8], 4294963200  ;;  %v1017_v0 = vmov 0.0|0.0   ;;  %vm1018_vm0 = vmmov 0   ;;  %v1019_v1 = vmov 0.0   ;;  %v66_v2 = vld [vmem:[#allocation9] sm:$0xff] }
  0x37   :  { %785 = vmatprep.subr.bf16.mxu0 %v1017_v0  ;;  %642 = vmatprep.mubr.msk.f32.mxu0 %vm1018_vm0, %v1019_v1  ;;  %v67_v3 = vld [vmem:[#allocation9 + $0x8] sm:$0xff]  ;;  %v68_v4 = vld [vmem:[#allocation9 + $0x10] sm:$0xff]  ;;  %v69_v6 = vld [vmem:[#allocation9 + $0x18] sm:$0xff]  ;;  %s345_s17 = smul.u32 2654435769, %s1230_s0  ;;  %s1020_s0 = smov [#allocation10]  }
  0x38   :  { %809 = vmatprep.subr.bf16.mxu1 %v1017_v0  ;;  %677 = vmatprep.mubr.msk.f32.mxu1 %vm1018_vm0, %v1019_v1  ;;  %v1109_v5 = vpack.c.bf16 %v67_v3, %v66_v2  ;;  %v1112_v7 = vpack.c.bf16 %v69_v6, %v68_v4  ;;  %v70_v8 = vld [vmem:[#allocation9 + $0x20] sm:$0xff]  ;;  %v71_v9 = vld [vmem:[#allocation9 + $0x28] sm:$0xff]  ;;  %v72_v11 = vld [vmem:[#allocation9 + $0x30] sm:$0xff] }
  0x39   :  { %v1118_v10 = vpack.c.bf16 %v71_v9, %v70_v8  ;;  %v73_v12 = vld [vmem:[#allocation9 + $0x38] sm:$0xff]  ;;  %v74_v14 = vld [vmem:[#allocation9 + $0x40] sm:$0xff]  ;;  %v75_v15 = vld [vmem:[#allocation9 + $0x48] sm:$0xff]  ;;  %v346_v6 = vstv %s345_s17 }
  0x3a   :  { %787 = vmatpush3.bf16.msra.mxu0 %v1109_v5  ;;  %811 = vmatpush3.bf16.msra.mxu1 %v1109_v5  ;;  %v1124_v13 = vpack.c.bf16 %v73_v12, %v72_v11  ;;  %v1130_v16 = vpack.c.bf16 %v75_v15, %v74_v14  ;;  %v76_v17 = vld [vmem:[#allocation9 + $0x50] sm:$0xff]  ;;  %v77_v18 = vld [vmem:[#allocation9 + $0x58] sm:$0xff]  ;;  %v78_v20 = vld [vmem:[#allocation9 + $0x60] sm:$0xff] }
  0x3b   :  { %788 = vmatprep.subr.bf16.mxu0 %v1017_v0  ;;  %812 = vmatprep.subr.bf16.mxu1 %v1017_v0  ;;  %v1136_v19 = vpack.c.bf16 %v77_v18, %v76_v17  ;;  %v79_v21 = vld [vmem:[#allocation9 + $0x68] sm:$0xff]  ;;  %v80_v23 = vld [vmem:[#allocation9 + $0x70] sm:$0xff]  ;;  %v81_v24 = vld [vmem:[#allocation9 + $0x78] sm:$0xff] }
  0x3c   :  { %v1142_v22 = vpack.c.bf16 %v79_v21, %v78_v20  ;;  %v1148_v25 = vpack.c.bf16 %v81_v24, %v80_v23  ;;  %v1154_v26 = vld [vmem:[#allocation4] sm:$0xff]  ;;  %v242_v27 = vld [vmem:[#allocation7] sm:$0xff]  ;;  %v243_v28 = vld [vmem:[#allocation7 + $0x8] sm:$0xff] }
  0x3d   :  { %v244_v29 = vld [vmem:[#allocation7 + $0x10] sm:$0xff]  ;;  %v834_v30 = vpack.c.bf16 %v243_v28, %v242_v27  ;;  %v245_v31 = vld [vmem:[#allocation7 + $0x18] sm:$0xff]  ;;  %v246_v33 = vld [vmem:[#allocation7 + $0x20] sm:$0xff] }
  0x3e   :  { %790 = vmatpush3.bf16.msra.mxu0 %v1112_v7  ;;  %814 = vmatpush3.bf16.msra.mxu1 %v1112_v7  ;;  %v837_v32 = vpack.c.bf16 %v245_v31, %v244_v29  ;;  %v247_v34 = vld [vmem:[#allocation7 + $0x28] sm:$0xff]  ;;  %v248_v40 = vld [vmem:[#allocation7 + $0x30] sm:$0xff]  ;;  %v249_v41 = vld [vmem:[#allocation7 + $0x38] sm:$0xff] }
  0x3f   :  { %791 = vmatprep.subr.bf16.mxu0 %v1017_v0  ;;  %815 = vmatprep.subr.bf16.mxu1 %v1017_v0  ;;  %v840_v35 = vpack.c.bf16 %v247_v34, %v246_v33  ;;  %v843_v42 = vpack.c.bf16 %v249_v41, %v248_v40  ;;  %v250_v43 = vld [vmem:[#allocation7 + $0x40] sm:$0xff]  ;;  %v251_v44 = vld [vmem:[#allocation7 + $0x48] sm:$0xff]  ;;  %v252_v46 = vld [vmem:[#allocation7 + $0x50] sm:$0xff] }
  0x40   :  { %v846_v45 = vpack.c.bf16 %v251_v44, %v250_v43  ;;  %v253_v47 = vld [vmem:[#allocation7 + $0x58] sm:$0xff]  ;;  %v254_v49 = vld [vmem:[#allocation7 + $0x60] sm:$0xff]  ;;  %v255_v50 = vld [vmem:[#allocation7 + $0x68] sm:$0xff] }
  0x41   :  { %v849_v48 = vpack.c.bf16 %v253_v47, %v252_v46  ;;  %v852_v51 = vpack.c.bf16 %v255_v50, %v254_v49  ;;  %v256_v52 = vld [vmem:[#allocation7 + $0x70] sm:$0xff]  ;;  %v257_v53 = vld [vmem:[#allocation7 + $0x78] sm:$0xff] }
  0x42   :  { %793 = vmatpush3.bf16.msra.mxu0 %v1118_v10  ;;  %817 = vmatpush3.bf16.msra.mxu1 %v1118_v10  ;;  %v855_v54 = vpack.c.bf16 %v257_v53, %v256_v52  ;;  %v522_v59 = vld [vmem:[%s1235_s5] ss:$0 sm:$0xff] }
  0x43   :  { %794 = vmatprep.subr.bf16.mxu0 %v1017_v0  ;;  %818 = vmatprep.subr.bf16.mxu1 %v1017_v0  ;;  %v523_v61 = vld [vmem:[%s1236_s6] ss:$0 sm:$0xff] }
  0x44   :  { %v524_v15 = vld [vmem:[%s1234_s4] ss:$0 sm:$0xff]  ;;  %s512_s4 = sshll.u32 %s1020_s0, 4  ;;  %s513_s4 = int_to_ptr.vmem [resolvable:$true] %s512_s4 }
  0x45   :  { %s984_s20 = scalar_lea.vmem %s513_s4, 128  ;;  %p989_p11 = scmp.lt.s32.totalorder %s513_s4, %s513_s4 }
  0x46   :  { %796 = vmatpush3.bf16.msra.mxu0 %v1124_v13  ;;  %820 = vmatpush3.bf16.msra.mxu1 %v1124_v13  ;;  %p985_p10 = scmp.ne.s32.totalorder %s513_s4, %s984_s20  ;;  %p990_p12 = scmp.lt.s32.totalorder %s984_s20, %s984_s20 }
  0x47   :  { %797 = vmatprep.subr.bf16.mxu0 %v1017_v0  ;;  %821 = vmatprep.subr.bf16.mxu1 %v1017_v0 }
  0x48   :  { %p991_p13 = por %p990_p12, %p989_p11 }
  0x4a   :  { %799 = vmatpush3.bf16.msra.mxu0 %v1130_v16  ;;  %823 = vmatpush3.bf16.msra.mxu1 %v1130_v16  ;;  %p992_p0 = pnand %p991_p13, %p985_p10 }
  0x4b   :  { %800 = vmatprep.subr.bf16.mxu0 %v1017_v0  ;;  %824 = vmatprep.subr.bf16.mxu1 %v1017_v0 }
  0x4e   :  { %802 = vmatpush3.bf16.msra.mxu0 %v1136_v19  ;;  %826 = vmatpush3.bf16.msra.mxu1 %v1136_v19 }
  0x4f   :  { %803 = vmatprep.subr.bf16.mxu0 %v1017_v0  ;;  %827 = vmatprep.subr.bf16.mxu1 %v1017_v0 }
  0x52   :  { %805 = vmatpush3.bf16.msra.mxu0 %v1142_v22  ;;  %829 = vmatpush3.bf16.msra.mxu1 %v1142_v22 }
  0x53   :  { %806 = vmatprep.subr.bf16.mxu0 %v1017_v0  ;;  %830 = vmatprep.subr.bf16.mxu1 %v1017_v0 }
  0x56   :  { %808 = vmatpush3.bf16.msra.mxu0 %v1148_v25  ;;  %832 = vmatpush3.bf16.msra.mxu1 %v1148_v25 }
  0x57   :  { %833 = vmatprep.subr.bf16.mxu0 %v1017_v0  ;;  %857 = vmatprep.subr.bf16.mxu1 %v1017_v0 }
  0x59   :  { %643 = vmatmul.mubr.f32.vlgmr.msra.gmra.mrb[0].mxu0 %v1154_v26 }
  0x5a   :  { %712 = vmatprep.mubr.msk.f32.mxu0 %vm1018_vm0, %v1019_v1  ;;  %835 = vmatpush3.bf16.msra.mxu0 %v834_v30 }
  0x5b   :  { %836 = vmatprep.subr.bf16.mxu0 %v1017_v0 }
  0x5e   :  { %838 = vmatpush3.bf16.msra.mxu0 %v837_v32 }
  0x5f   :  { %839 = vmatprep.subr.bf16.mxu0 %v1017_v0 }
  0x62   :  { %841 = vmatpush3.bf16.msra.mxu0 %v840_v35 }
  0x63   :  { %842 = vmatprep.subr.bf16.mxu0 %v1017_v0 }
  0x66   :  { %844 = vmatpush3.bf16.msra.mxu0 %v843_v42 }
  0x67   :  { %845 = vmatprep.subr.bf16.mxu0 %v1017_v0 }
  0x6a   :  { %847 = vmatpush3.bf16.msra.mxu0 %v846_v45 }
  0x6b   :  { %848 = vmatprep.subr.bf16.mxu0 %v1017_v0 }
  0x6e   :  { %850 = vmatpush3.bf16.msra.mxu0 %v849_v48 }
  0x6f   :  { %851 = vmatprep.subr.bf16.mxu0 %v1017_v0 }
  0x72   :  { %853 = vmatpush3.bf16.msra.mxu0 %v852_v51 }
  0x73   :  { %854 = vmatprep.subr.bf16.mxu0 %v1017_v0 }
  0x76   :  { %856 = vmatpush3.bf16.msra.mxu0 %v855_v54 }
  0x77   :  { %881 = vmatprep.subr.bf16.mxu0 %v1017_v0 }
 0x12c   :  { %v150_v36 = vpop.f32.mrb[0].mxu0 }
 0x12d   :  { %v154_v37 = vsub.f32 %v1154_v26, %v150_v36  ;;  %v644_v38 = vpop.f32.mrb[1].mxu0 }
 0x12f   :  { %v155_v39 = vmul.f32 %v154_v37, %v154_v37 }
 0x131   :  { %678 = vmatmul.mubr.f32.vlgmr.msra.gmra.mrb[0].mxu1 %v155_v39 }
 0x132   :  { %859 = vmatpush3.bf16.msra.mxu1 %v1109_v5  ;;  %747 = vmatprep.mubr.msk.f32.mxu1 %vm1018_vm0, %v1019_v1 }
 0x133   :  { %860 = vmatprep.subr.bf16.mxu1 %v1017_v0 }
 0x136   :  { %862 = vmatpush3.bf16.msra.mxu1 %v1112_v7 }
 0x137   :  { %863 = vmatprep.subr.bf16.mxu1 %v1017_v0 }
 0x13a   :  { %865 = vmatpush3.bf16.msra.mxu1 %v1118_v10 }
 0x13b   :  { %866 = vmatprep.subr.bf16.mxu1 %v1017_v0 }
 0x13e   :  { %868 = vmatpush3.bf16.msra.mxu1 %v1124_v13 }
 0x13f   :  { %869 = vmatprep.subr.bf16.mxu1 %v1017_v0 }
 0x142   :  { %871 = vmatpush3.bf16.msra.mxu1 %v1130_v16 }
 0x143   :  { %872 = vmatprep.subr.bf16.mxu1 %v1017_v0 }
 0x146   :  { %874 = vmatpush3.bf16.msra.mxu1 %v1136_v19 }
 0x147   :  { %875 = vmatprep.subr.bf16.mxu1 %v1017_v0 }
 0x14a   :  { %877 = vmatpush3.bf16.msra.mxu1 %v1142_v22 }
 0x14b   :  { %878 = vmatprep.subr.bf16.mxu1 %v1017_v0 }
 0x14e   :  { %880 = vmatpush3.bf16.msra.mxu1 %v1148_v25 }
 0x204   :  { %v222_v55 = vpop.f32.mrb[0].mxu1 }
 0x205   :  { %v223_v56 = vadd.f32 1e-05, %v222_v55  ;;  %v679_v57 = vpop.f32.mrb[1].mxu1 }
 0x207   :  { %914 = vrsqrt.f32 %v223_v56 }
 0x211   :  { %v915_v58 = vpop.eup %914 }
 0x212   :  { %v227_v60 = vmul.f32 %v915_v58, %v154_v37 }
 0x214   :  { %v234_v62 = vmul.f32 %v522_v59, %v227_v60 }
 0x216   :  { %v241_v63 = vadd.f32 %v523_v61, %v234_v62 }
 0x218   :  { %713 = vmatmul.mubr.f32.vlgmr.msra.gmra.mrb[2].mxu0 %v241_v63 }
 0x219   :  { %883 = vmatpush3.bf16.msra.mxu0 %v1109_v5  ;;  %782 = vmatprep.mubr.msk.f32.mxu0 %vm1018_vm0, %v1019_v1  ;;  %v335_v1 = vlaneseq }
 0x21a   :  { %884 = vmatprep.subr.bf16.mxu0 %v1017_v0 }
 0x21b   :  { %v336_v2 = vshrl.u32 %v335_v1, 7  ;;  %v338_v3 = vand.u32 127, %v335_v1 }
 0x21d   :  { %886 = vmatpush3.bf16.msra.mxu0 %v1112_v7  ;;  %v342_v4 = vmul.u32 128, %v336_v2 }
 0x21e   :  { %887 = vmatprep.subr.bf16.mxu0 %v1017_v0 }
 0x21f   :  { %v343_v5 = vadd.s32 %v342_v4, %v338_v3 }
 0x221   :  { %889 = vmatpush3.bf16.msra.mxu0 %v1118_v10  ;;  %v347_v7 = vxor.u32 %v346_v6, %v343_v5 }
 0x222   :  { %890 = vmatprep.subr.bf16.mxu0 %v1017_v0 }
 0x223   :  { %v348_v8 = vshrl.u32 %v347_v7, 16 }
 0x225   :  { %892 = vmatpush3.bf16.msra.mxu0 %v1124_v13  ;;  %v349_v9 = vxor.u32 %v348_v8, %v347_v7 }
 0x226   :  { %893 = vmatprep.subr.bf16.mxu0 %v1017_v0 }
 0x227   :  { %v350_v10 = vmul.u32 2146121005, %v349_v9 }
 0x229   :  { %895 = vmatpush3.bf16.msra.mxu0 %v1130_v16  ;;  %v351_v11 = vshrl.u32 %v350_v10, 15 }
 0x22a   :  { %896 = vmatprep.subr.bf16.mxu0 %v1017_v0 }
 0x22b   :  { %v352_v12 = vxor.u32 %v351_v11, %v350_v10 }
 0x22d   :  { %898 = vmatpush3.bf16.msra.mxu0 %v1136_v19  ;;  %v353_v13 = vmul.u32 2221713035, %v352_v12 }
 0x22e   :  { %899 = vmatprep.subr.bf16.mxu0 %v1017_v0 }
 0x231   :  { %901 = vmatpush3.bf16.msra.mxu0 %v1142_v22 }
 0x232   :  { %902 = vmatprep.subr.bf16.mxu0 %v1017_v0  ;;  %v354_v0 = vshrl.u32 %v353_v13, 16 }
 0x234   :  { %v355_v14 = vxor.u32 %v354_v0, %v353_v13 }
 0x235   :  { %904 = vmatpush3.bf16.msra.mxu0 %v1148_v25 }
 0x236   :  { %vm356_vm1 = vcmp.ge.u32.totalorder %v355_v14, 0 }
 0x2eb   :  { %v331_v16 = vpop.f32.mrb[2].mxu0 }
 0x2ec   :  { %v332_v17 = vadd.f32 %v524_v15, %v331_v16  ;;  %v714_v18 = vpop.f32.mrb[3].mxu0 }
 0x2ee   :  { %v357_v19 = vsel %vm356_vm1, %v332_v17, 0.0 }
 0x2ef   :  { %v358_v20 = vadd.f32 %v357_v19, %v1154_v26 }
 0x2f1   :  { %748 = vmatmul.mubr.f32.vlgmr.msra.gmra.mrb[2].mxu1 %v358_v20 }
 0x3c4   :  { %v425_v21 = vpop.f32.mrb[2].mxu1 }
 0x3c5   :  { %v429_v22 = vsub.f32 %v358_v20, %v425_v21  ;;  %v749_v23 = vpop.f32.mrb[3].mxu1 }
 0x3c7   :  { %v430_v24 = vmul.f32 %v429_v22, %v429_v22 }
 0x3c9   :  { %783 = vmatmul.mubr.f32.vlgmr.msra.gmra.mrb[4].mxu0 %v430_v24 }
 0x49c   :  { %v497_v25 = vpop.f32.mrb[4].mxu0 }
 0x49d   :  { %v498_v27 = vadd.f32 1e-05, %v497_v25  ;;  %v784_v28 = vpop.f32.mrb[5].mxu0 }
 0x49f   :  { %916 = vrsqrt.f32 %v498_v27 }
 0x4a9   :  { %v917_v29 = vpop.eup %916 }
 0x4aa   :  { %v502_v30 = vmul.f32 %v917_v29, %v429_v22 }
 0x4ac   :  { %v503_v31 = vmul.f32 %v522_v59, %v502_v30 }
 0x4ae   :  { %v504_v32 = vadd.f32 %v523_v61, %v503_v31 }
 0x4b0   :  { %505 = vst [vmem:[#allocation10] sm:$0xff] %v504_v32 }
 0x4b1   :  { %995 = shalt.err (!%p992_p0)
}
 0x4b2   :  { %s996_s23 = scalar_lea.hbm %s1237_s7, 128 }
 0x4b3   :  { %p997_p1 = scmp.ne.s32.totalorder %s1237_s7, %s996_s23  ;;  %p1000_p2 = scmp.lt.u32.totalorder %s996_s23, %s1237_s7 }
 0x4b5   :  { %p1002_p3 = pnand %p1000_p2, %p997_p1 }
 0x4b7   :  { %1005 = shalt.err (!%p1002_p3)
}
 0x4b8   :  { %515 = dma.vmem_to_hbm [thread:$0]  %s513_s4, 128, %s1237_s7, [#allocation6]  }
 0x4b9   :  { %1010 = dma.done.wait [#allocation6], 128  }
 0x4ba   :  { %1011 = vsyncadd [#allocation6], 4294967168 }
 0x4bb   :  { %519 = vsyncpa [#allocation5], 1 }
 0x4bc   :  { %520 = vsyncpa [#allocation8], 1 }
 0x4bd   :  { %521 = vsyncpa [#allocation6], 1 }

</bundles_post_ra>
